<compile_context>
chip_gen: v7x
topology: tpu7x:2x2x1
jax: 0.10.0
libtpu: 0.0.40
codegen_flags: <defaults>
</compile_context>

<pallas_src>
import jax
import jax.numpy as jnp
from jax.experimental import pallas as pl
from jax.experimental.pallas import tpu as pltpu


_SMALL_BYTES = 1 << 20            # <= 1 MiB total -> single-block path
_W_RESIDENT_BYTES = 2 << 20       # weight <= 2 MiB -> keep it VMEM-resident
_VMEM_WORKSET_BYTES = 40 << 20    # double-buffered working-set budget (v7x-safe)
_VMEM_LIMIT_BYTES = 48 << 20      # scoped VMEM limit handed to Mosaic


def _round_up(x, m):
    return ((x + m - 1) // m) * m


# ---------------------------------------------------------------- kernels ---

def _single_block_kernel(x_ref, w_ref, o_ref):
    o_ref[...] = jnp.dot(
        x_ref[...], w_ref[...], preferred_element_type=jnp.float32
    ).astype(o_ref.dtype)


def _w_resident_kernel(x_ref, w_ref, o_ref):
    # w_ref is the whole (J, N) weight; constant index_map -> fetched once.
    o_ref[...] = jnp.dot(
        x_ref[...], w_ref[...], preferred_element_type=jnp.float32
    ).astype(o_ref.dtype)


def _tiled_kernel(x_ref, w_ref, o_ref, acc_ref):
    @pl.when(pl.program_id(2) == 0)
    def _():
        acc_ref[...] = jnp.zeros_like(acc_ref)

    acc_ref[...] += jnp.dot(
        x_ref[...], w_ref[...], preferred_element_type=jnp.float32
    )

    @pl.when(pl.program_id(2) == pl.num_programs(2) - 1)
    def _():
        o_ref[...] = acc_ref[...].astype(o_ref.dtype)


# ------------------------------------------------------------ matmul paths ---

def _matmul_small(x2d, w2d, out_dtype):
    M, J = x2d.shape
    _, N = w2d.shape
    it = x2d.dtype.itemsize
    out_it = jnp.dtype(out_dtype).itemsize
    return pl.pallas_call(
        _single_block_kernel,
        out_shape=jax.ShapeDtypeStruct((M, N), out_dtype),
        grid_spec=pltpu.PrefetchScalarGridSpec(
            num_scalar_prefetch=0,
            grid=(1,),
            in_specs=[
                pl.BlockSpec((M, J), lambda i: (0, 0)),
                pl.BlockSpec((J, N), lambda i: (0, 0)),
            ],
            out_specs=pl.BlockSpec((M, N), lambda i: (0, 0)),
        ),
        compiler_params=pltpu.CompilerParams(
            dimension_semantics=("arbitrary",),
            vmem_limit_bytes=_VMEM_LIMIT_BYTES,
        ),
        cost_estimate=pl.CostEstimate(
            flops=2 * M * N * J,
            transcendentals=0,
            bytes_accessed=(M * J + J * N) * it + M * N * out_it,
        ),
    )(x2d, w2d)


def _matmul_w_resident(x2d, w2d, out_dtype, tm):
    M, J = x2d.shape
    _, N = w2d.shape
    it = x2d.dtype.itemsize
    out_it = jnp.dtype(out_dtype).itemsize

    tm = 256 if tm is None else tm
    tm = _round_up(min(tm, _round_up(M, 8)), 8)

    def workset(tm_):
        # resident weight (worst-case 2 bufs) + double-buffered x/out tiles.
        return 2 * J * N * it + 2 * tm_ * J * it + 2 * tm_ * N * out_it

    while workset(tm) > _VMEM_WORKSET_BYTES and tm > 8:
        tm = max(8, _round_up(tm // 2, 8))

    Mp = _round_up(M, tm)
    xp = jnp.pad(x2d, ((0, Mp - M), (0, 0))) if Mp != M else x2d

    out = pl.pallas_call(
        _w_resident_kernel,
        out_shape=jax.ShapeDtypeStruct((Mp, N), out_dtype),
        grid_spec=pltpu.PrefetchScalarGridSpec(
            num_scalar_prefetch=0,
            grid=(Mp // tm,),
            in_specs=[
                pl.BlockSpec((tm, J), lambda i: (i, 0)),
                pl.BlockSpec((J, N), lambda i: (0, 0)),  # weight fetched once
            ],
            out_specs=pl.BlockSpec((tm, N), lambda i: (i, 0)),
        ),
        compiler_params=pltpu.CompilerParams(
            dimension_semantics=("parallel",),
            vmem_limit_bytes=_VMEM_LIMIT_BYTES,
        ),
        cost_estimate=pl.CostEstimate(
            flops=2 * Mp * N * J,
            transcendentals=0,
            bytes_accessed=(Mp * J + J * N) * it + Mp * N * out_it,
        ),
    )(xp, w2d)
    return out[:M] if Mp != M else out


def _matmul_tiled(x2d, w2d, out_dtype, tm, tn, tk):
    M, J = x2d.shape
    _, N = w2d.shape
    it = x2d.dtype.itemsize
    out_it = jnp.dtype(out_dtype).itemsize

    tm = 512 if tm is None else tm
    tn = 512 if tn is None else tn
    tk = 2048 if tk is None else tk
    tm = _round_up(min(tm, _round_up(M, 8)), 8)
    tn = _round_up(min(tn, _round_up(N, 128)), 128)
    tk = _round_up(min(tk, _round_up(J, 128)), 128)

    def workset(tm_, tn_, tk_):
        return (2 * (tm_ * tk_ + tk_ * tn_) * it   # double-buffered input tiles
                + 2 * tm_ * tn_ * out_it           # double-buffered output tile
                + tm_ * tn_ * 4)                   # f32 accumulator scratch

    while workset(tm, tn, tk) > _VMEM_WORKSET_BYTES:
        if tk > 128:
            tk = _round_up(tk // 2, 128)
        elif tn > 128:
            tn = _round_up(tn // 2, 128)
        elif tm > 8:
            tm = max(8, _round_up(tm // 2, 8))
        else:
            break

    Mp, Np, Jp = _round_up(M, tm), _round_up(N, tn), _round_up(J, tk)
    xp = x2d if (Mp, Jp) == (M, J) else jnp.pad(x2d, ((0, Mp - M), (0, Jp - J)))
    wp = w2d if (Jp, Np) == (J, N) else jnp.pad(w2d, ((0, Jp - J), (0, Np - N)))
    gm, gn, gk = Mp // tm, Np // tn, Jp // tk

    out = pl.pallas_call(
        _tiled_kernel,
        out_shape=jax.ShapeDtypeStruct((Mp, Np), out_dtype),
        grid_spec=pltpu.PrefetchScalarGridSpec(
            num_scalar_prefetch=0,
            grid=(gm, gn, gk),
            in_specs=[
                pl.BlockSpec((tm, tk), lambda i, j, k: (i, k)),
                pl.BlockSpec((tk, tn), lambda i, j, k: (k, j)),
            ],
            out_specs=pl.BlockSpec((tm, tn), lambda i, j, k: (i, j)),
            scratch_shapes=[pltpu.VMEM((tm, tn), jnp.float32)],
        ),
        compiler_params=pltpu.CompilerParams(
            dimension_semantics=("parallel", "parallel", "arbitrary"),
            vmem_limit_bytes=_VMEM_LIMIT_BYTES,
        ),
        cost_estimate=pl.CostEstimate(
            flops=2 * Mp * Np * Jp,
            transcendentals=0,
            bytes_accessed=(Mp * Jp * gn + Jp * Np * gm) * it + Mp * Np * out_it,
        ),
    )(xp, wp)
    return out[:M, :N] if (Mp, Np) != (M, N) else out


# ------------------------------------------------------------------ public ---

def linear3d(x, weight, *, compute_dtype=None, tm=None, tn=None, tk=None,
             path=None):
    """x: (B, I, J), weight: (J, K, L) -> einsum('bij,jkl->bikl') = (B, I, K, L)."""
    assert x.ndim == 3 and weight.ndim == 3
    B, I, J = x.shape
    Jw, K, L = weight.shape
    if J != Jw:
        raise ValueError(f"contraction dims must match: {J} vs {Jw}")

    M, N = B * I, K * L
    out_dtype = jnp.result_type(x.dtype, weight.dtype)

    x2d = x.reshape(M, J)
    w2d = weight.reshape(J, N)          # row-major, matches torch's view
    if compute_dtype is not None:       # optional bf16 MXU-native path
        x2d = x2d.astype(compute_dtype)
        w2d = w2d.astype(compute_dtype)

    it = x2d.dtype.itemsize
    out_it = jnp.dtype(out_dtype).itemsize

    if path is None:
        total_bytes = (M * J + J * N) * it + M * N * out_it
        w_bytes = J * N * it
        min_resident_ws = 2 * J * N * it + 2 * 8 * J * it + 2 * 8 * N * out_it
        if total_bytes <= _SMALL_BYTES:
            path = "small"
        elif w_bytes <= _W_RESIDENT_BYTES and min_resident_ws <= _VMEM_WORKSET_BYTES:
            path = "wresident"
        else:
            path = "tiled"

    if path == "small":
        out2d = _matmul_small(x2d, w2d, out_dtype)
    elif path == "wresident":
        out2d = _matmul_w_resident(x2d, w2d, out_dtype, tm)
    elif path == "tiled":
        out2d = _matmul_tiled(x2d, w2d, out_dtype, tm, tn, tk)
    else:
        raise ValueError(f"unknown path: {path!r}")

    return out2d.reshape(B, I, K, L)


# -------------------------------------------------------------------- test ---

if __name__ == "__main__":
    key = jax.random.PRNGKey(0)

    # Test 1: tiny module-sized shapes -> single-block path (no grid overhead).
    B, I, J, K, L = 2, 8, 32, 4, 32
    k1, k2, key = jax.random.split(key, 3)
    x = jax.random.normal(k1, (B, I, J), dtype=jnp.float32)
    weight = jax.random.normal(k2, (J, K, L), dtype=jnp.float32) * 0.02
    out = jax.block_until_ready(linear3d(x, weight))
    ref = jnp.einsum("bij,jkl->bikl", x, weight,
                     precision=jax.lax.Precision.HIGHEST)
    assert out.shape == (B, I, K, L), out.shape
    assert jnp.allclose(out, ref, atol=1e-5, rtol=1e-5), "small-path mismatch"

    # bf16 compute path (MXU-native on v6e/v7x), f32 accumulation.
    out_bf = jax.block_until_ready(linear3d(x, weight, compute_dtype=jnp.bfloat16))
    assert jnp.allclose(out_bf, ref, atol=1e-2, rtol=5e-2), "bf16-path mismatch"

    # Test 2: weight-resident path (weight DMA'd once, x row-tiles stream).
    B, I, J, K, L = 2, 300, 160, 6, 64
    k1, k2, key = jax.random.split(key, 3)
    x = jax.random.normal(k1, (B, I, J), dtype=jnp.float32)
    weight = jax.random.normal(k2, (J, K, L), dtype=jnp.float32) * 0.02
    out = jax.block_until_ready(linear3d(x, weight))
    ref = jnp.einsum("bij,jkl->bikl", x, weight,
                     precision=jax.lax.Precision.HIGHEST)
    assert out.shape == (B, I, K, L), out.shape
    assert jnp.allclose(out, ref, atol=5e-3, rtol=5e-3), "wresident mismatch"

    # Test 3: general tiled path -- forced small tiles to exercise padding on
    # all dims and the multi-step J-reduction accumulator.
    B, I, J, K, L = 2, 350, 704, 5, 120
    k1, k2, key = jax.random.split(key, 3)
    x = jax.random.normal(k1, (B, I, J), dtype=jnp.float32)
    weight = jax.random.normal(k2, (J, K, L), dtype=jnp.float32) * 0.02
    out = jax.block_until_ready(
        linear3d(x, weight, path="tiled", tm=256, tn=256, tk=256))
    ref = jnp.einsum("bij,jkl->bikl", x, weight,
                     precision=jax.lax.Precision.HIGHEST)
    assert out.shape == (B, I, K, L), out.shape
    assert jnp.allclose(out, ref, atol=5e-3, rtol=5e-3), "tiled mismatch"

    print("KERNEL_OK")
</pallas_src>

<mosaic_0001>
module attributes {stable_mosaic.version = 11 : i64} {
  func.func @_single_block_kernel(%arg0: i32, %arg1: memref<16x32xf32, #tpu.memory_space<vmem>>, %arg2: memref<32x128xf32, #tpu.memory_space<vmem>>, %arg3: memref<16x128xf32, #tpu.memory_space<vmem>>) attributes {dimension_semantics = [#tpu.dimension_semantics<arbitrary>], iteration_bounds = array<i64: 1>, scalar_prefetch = 0 : i64, scratch_operands = 0 : i64, tpu.core_type = #tpu.core_type<tc>, window_params = [{pipeline_mode = #tpu.pipeline_mode<synchronous>, transform_indices = @transform_0, window_bounds = array<i64: 16, 32>}, {pipeline_mode = #tpu.pipeline_mode<synchronous>, transform_indices = @transform_1, window_bounds = array<i64: 32, 128>}, {pipeline_mode = #tpu.pipeline_mode<synchronous>, transform_indices = @transform_2, window_bounds = array<i64: 16, 128>}]} {
    %c0 = arith.constant 0 : index
    %c0_0 = arith.constant 0 : index
    %0 = vector.load %arg1[%c0, %c0_0] : memref<16x32xf32, #tpu.memory_space<vmem>>, vector<16x32xf32>
    %c0_1 = arith.constant 0 : index
    %c0_2 = arith.constant 0 : index
    %1 = vector.load %arg2[%c0_1, %c0_2] : memref<32x128xf32, #tpu.memory_space<vmem>>, vector<32x128xf32>
    %cst = arith.constant dense<0.000000e+00> : vector<16x128xf32>
    %2 = tpu.matmul %0, %1, %cst {dimension_numbers = #tpu.dot_dimension_numbers<[1], [0], [0], [1], [0, 0, 1, 1], [], []>} : vector<16x32xf32>, vector<32x128xf32>, vector<16x128xf32> -> vector<16x128xf32>
    %c0_3 = arith.constant 0 : index
    %c0_4 = arith.constant 0 : index
    %3 = vector.load %arg3[%c0_3, %c0_4] : memref<16x128xf32, #tpu.memory_space<vmem>>, vector<16x128xf32>
    tpu.vector_store %arg3[%c0_3, %c0_4], %2 {strides = array<i32>} : memref<16x128xf32, #tpu.memory_space<vmem>>, vector<16x128xf32>,
    return
  }
  func.func @transform_0(%arg0: i32) -> (i32, i32) {
    %c0_i32 = arith.constant 0 : i32
    %c0_i32_0 = arith.constant 0 : i32
    %c0_i32_1 = arith.constant 0 : i32
    return %c0_i32, %c0_i32_0 : i32, i32
  }
  func.func @transform_1(%arg0: i32) -> (i32, i32) {
    %c0_i32 = arith.constant 0 : i32
    %c0_i32_0 = arith.constant 0 : i32
    %c0_i32_1 = arith.constant 0 : i32
    return %c0_i32, %c0_i32_0 : i32, i32
  }
  func.func @transform_2(%arg0: i32) -> (i32, i32) {
    %c0_i32 = arith.constant 0 : i32
    %c0_i32_0 = arith.constant 0 : i32
    %c0_i32_1 = arith.constant 0 : i32
    return %c0_i32, %c0_i32_0 : i32, i32
  }
}

</mosaic_0001>

<bundles_post_ra>
// kernel: tpu_custom_call.1
= control target key start
LH: loop header
LB: loop body
LE: loop exit
PB: predicated region body
PF: predicated region fallthrough
CT: control target
= control target key end

     0   :  { %7 = vsyncpa [#allocation3], 0  ;;  %s317_s0 = inlined_call_operand.hbm [shape: f32[16,32], index: 0, kind: input, shape index: {}]   ;;  %s318_s1 = inlined_call_operand.hbm [shape: f32[32,128], index: 1, kind: input, shape index: {}]   ;;  %s319_s2 = inlined_call_operand.hbm [shape: f32[16,128], index: 2, kind: output, shape index: {}]  }
   0x1   :  { %8 = vsyncpa [#allocation6], 0 }
   0x2   :  { %9 = vsyncpa [#allocation4], 0  ;;  %s252_s9 = smov [#allocation2]   ;;  %s180_s13 = scalar_lea.hbm %s317_s0, 256 }
   0x3   :  { %s15_s10 = sshll.u32 %s252_s9, 4  ;;  %p181_p0 = scmp.ne.s32.totalorder %s317_s0, %s180_s13  ;;  %s16_s10 = int_to_ptr.vmem [resolvable:$true] %s15_s10 }
   0x4   :  { %p184_p1 = scmp.lt.u32.totalorder %s180_s13, %s317_s0 }
   0x6   :  { %p186_p2 = pnand %p184_p1, %p181_p0 }
   0x8   :  { %189 = shalt.err (!%p186_p2)
}
   0x9   :  { %s190_s18 = scalar_lea.vmem %s16_s10, 256  ;;  %p195_p4 = scmp.lt.s32.totalorder %s16_s10, %s16_s10 }
   0xa   :  { %p191_p3 = scmp.ne.s32.totalorder %s16_s10, %s190_s18  ;;  %p196_p5 = scmp.lt.s32.totalorder %s190_s18, %s190_s18 }
   0xc   :  { %p197_p6 = por %p196_p5, %p195_p4 }
   0xe   :  { %p198_p7 = pnand %p197_p6, %p191_p3 }
  0x10   :  { %201 = shalt.err (!%p198_p7)
}
  0x11   :  { %s253_s19 = smov 128   ;;  %s254_s20 = smov 8  }
  0x12   :  { %21 = dma.hbm_to_vmem [thread:$0]  %s317_s0, 256, %s16_s10, [#allocation3], %s253_s19, %s253_s19, %s254_s20  }
  0x13   :  { %s255_s23 = smov [#allocation5]   ;;  %s202_s27 = scalar_lea.hbm %s318_s1, 512 }
  0x14   :  { %s27_s24 = sshll.u32 %s255_s23, 4  ;;  %p203_p8 = scmp.ne.s32.totalorder %s318_s1, %s202_s27  ;;  %s28_s24 = int_to_ptr.vmem [resolvable:$true] %s27_s24 }
  0x15   :  { %p206_p9 = scmp.lt.u32.totalorder %s202_s27, %s318_s1 }
  0x17   :  { %p208_p10 = pnand %p206_p9, %p203_p8 }
  0x19   :  { %211 = shalt.err (!%p208_p10)
}
  0x1a   :  { %s212_s4 = scalar_lea.vmem %s28_s24, 512  ;;  %p217_p12 = scmp.lt.s32.totalorder %s28_s24, %s28_s24 }
  0x1b   :  { %p213_p11 = scmp.ne.s32.totalorder %s28_s24, %s212_s4  ;;  %p218_p13 = scmp.lt.s32.totalorder %s212_s4, %s212_s4 }
  0x1d   :  { %p219_p0 = por %p218_p13, %p217_p12 }
  0x1f   :  { %p220_p1 = pnand %p219_p0, %p213_p11 }
  0x21   :  { %223 = shalt.err (!%p220_p1)
}
  0x22   :  { %33 = dma.hbm_to_vmem [thread:$0]  %s318_s1, 512, %s28_s24, [#allocation6], %s253_s19, %s253_s19, %s254_s20  }
  0x23   :  { %246 = dma.done.wait [#allocation3], 256  }
  0x24   :  { %247 = vsyncadd [#allocation3], 4294967040 }
  0x25   :  { %248 = dma.done.wait [#allocation6], 512  }
  0x26   :  { %249 = vsyncadd [#allocation6], 4294966784  ;;  %vm46_vm0 = vcmask 261120   ;;  %v42_v0 = vld [vmem:[#allocation5] sm:$0xff]  ;;  %v43_v1 = vld [vmem:[#allocation5 + $0x8] sm:$0xff]  ;;  %s256_s1 = smov [#allocation7]  }
  0x27   :  { %v44_v2 = vld [vmem:[#allocation5 + $0x10] sm:$0xff]  ;;  %v167_v3 = vpack.c.bf16 %v43_v1, %v42_v0  ;;  %v45_v4 = vld [vmem:[#allocation5 + $0x18] sm:$0xff]  ;;  %s135_s6 = sshll.u32 %s256_s1, 4  ;;  %s136_s6 = int_to_ptr.vmem [resolvable:$true] %s135_s6 }
  0x28   :  { %v40_v5 = vld [vmem:[#allocation2] sm:$0xff]  ;;  %v171_v6 = vpack.c.bf16 %v45_v4, %v44_v2  ;;  %v41_v7 = vld [vmem:[#allocation2 + $0x8] sm:$0xff]  ;;  %s224_s7 = scalar_lea.vmem %s136_s6, 256  ;;  %p229_p3 = scmp.lt.s32.totalorder %s136_s6, %s136_s6 }
  0x29   :  { %164 = vmatprep.mubr.msk.f32.mxu0 %vm46_vm0, %v40_v5  ;;  %168 = vmatprep.subr.bf16.mxu0 %v167_v3  ;;  %p225_p2 = scmp.ne.s32.totalorder %s136_s6, %s224_s7  ;;  %p230_p4 = scmp.lt.s32.totalorder %s224_s7, %s224_s7 }
  0x2a   :  { %170 = vmatpush3.bf16.msra.mxu0 %v167_v3 }
  0x2b   :  { %172 = vmatprep.subr.bf16.mxu0 %v171_v6  ;;  %p231_p5 = por %p230_p4, %p229_p3 }
  0x2d   :  { %p232_p6 = pnand %p231_p5, %p225_p2 }
  0x2e   :  { %174 = vmatpush3.bf16.msra.mxu0 %v171_v6 }
  0x31   :  { %165 = vmatmul.mubr.msk.f32.vlgmr.msra.gmra.mrb[0].mxu0 %vm46_vm0, %v41_v7 }
 0x104   :  { %v166_v8 = vpop.f32.mrb[0].mxu0 }
 0x105   :  { %129 = vst [vmem:[#allocation7 + $0x8] sm:$0xff] %v166_v8  ;;  %v119_v9 = vpop.f32.mrb[1].mxu0 }
 0x106   :  { %128 = vst [vmem:[#allocation7] sm:$0xff] %v119_v9 }
 0x107   :  { %235 = shalt.err (!%p232_p6)
}
 0x108   :  { %s236_s10 = scalar_lea.hbm %s319_s2, 256 }
 0x109   :  { %p237_p7 = scmp.ne.s32.totalorder %s319_s2, %s236_s10  ;;  %p240_p8 = scmp.lt.u32.totalorder %s236_s10, %s319_s2 }
 0x10b   :  { %p242_p9 = pnand %p240_p8, %p237_p7 }
 0x10d   :  { %245 = shalt.err (!%p242_p9)
}
 0x10e   :  { %141 = dma.vmem_to_hbm [thread:$0]  %s136_s6, 256, %s319_s2, [#allocation4], %s253_s19, %s253_s19, %s254_s20  }
 0x10f   :  { %250 = dma.done.wait [#allocation4], 256  }
 0x110   :  { %251 = vsyncadd [#allocation4], 4294967040 }
 0x111   :  { %145 = vsyncpa [#allocation3], 1 }
 0x112   :  { %146 = vsyncpa [#allocation6], 1 }
 0x113   :  { %147 = vsyncpa [#allocation4], 1 }

</bundles_post_ra>
